<compile_context>
chip_gen: v6e
topology: v6e:2x2x1
jax: 0.10.0
libtpu: 0.0.40
codegen_flags: <defaults>
</compile_context>

<pallas_src>
import jax
import jax.numpy as jnp
from jax.experimental import pallas as pl
from jax.experimental.pallas import tpu as pltpu


_BATCH_TILE = 256  # per-tile batch when the rollout is large (grid axis marked "parallel")


def _round_up(n, m):
    return ((n + m - 1) // m) * m


def _make_policy_kernel(d_in, h, d_out):
    """Kernel closure over static layer dims. Expects:
       x_ref   : (tb, d_in + 1)  observation rows augmented with a trailing 1-column
       p_ref   : packed weight slab  [W1;b1] at rows [0, d_in+1), [W2;b2] at rows [r1, r1+h+1)
       g_ref   : (tb, d_out) Gumbel(0,1) noise
       out_ref : (tb, 2) f32  -> col 0 = sampled action (as float), col 1 = log-prob
    """
    din1 = d_in + 1
    r1 = _round_up(din1, 8)  # sublane-aligned start row of the second layer's weights

    def kernel(x_ref, p_ref, g_ref, out_ref):
        x = x_ref[...]                                   # (tb, d_in+1)
        w1 = p_ref[0:din1, 0:h]                          # (d_in+1, h)   bias folded as last row
        w2 = p_ref[r1:r1 + h, 0:d_out]                   # (h, d_out)
        b2 = p_ref[r1 + h:r1 + h + 1, 0:d_out]           # (1, d_out)

        # ---- MLP: relu after every layer (including the last, per `reduce`) ----
        hid = jnp.maximum(jnp.dot(x, w1, preferred_element_type=jnp.float32), 0.0)
        o = jnp.dot(hid, w2, preferred_element_type=jnp.float32) + b2
        o = jnp.maximum(o, 0.0)

        # ---- log-softmax over the feature (lane) axis ----
        m = jnp.max(o, axis=-1, keepdims=True)
        z = o - m
        logp = z - jnp.log(jnp.sum(jnp.exp(z), axis=-1, keepdims=True))   # (tb, d_out)

        # ---- fused categorical sample via Gumbel-max (noise supplied by the wrapper) ----
        scores = logp + g_ref[...]
        lane = jax.lax.broadcasted_iota(jnp.int32, scores.shape, 1)
        best = jnp.max(scores, axis=-1, keepdims=True)
        idx = jnp.min(jnp.where(scores == best, lane, d_out),
                      axis=-1, keepdims=True)                             # (tb, 1) int32
        sel = jnp.sum(jnp.where(lane == idx, logp, 0.0),
                      axis=-1, keepdims=True)                             # (tb, 1) f32

        # Single packed output slab: [action_as_float, log_prob].
        out_ref[:, 0:1] = idx.astype(jnp.float32)
        out_ref[:, 1:2] = sel

    return kernel


def _policy_sample(x_aug, params_slab, gumbel, dims):
    """x_aug: (B, d_in+1); params_slab: packed weights; gumbel: (B, d_out).
    B must be a multiple of 8 (and of _BATCH_TILE when B > _BATCH_TILE)."""
    d_in, h, d_out = dims
    B = x_aug.shape[0]
    kernel = _make_policy_kernel(d_in, h, d_out)
    out_shape = jax.ShapeDtypeStruct((B, 2), jnp.float32)
    vmem = pl.BlockSpec(memory_space=pltpu.MemorySpace.VMEM)

    if B <= _BATCH_TILE:
        # Grid-less: whole-array VMEM tiles, no pipeline prologue/epilogue.
        return pl.pallas_call(
            kernel,
            out_shape=out_shape,
            in_specs=[vmem, vmem, vmem],
            out_specs=vmem,
        )(x_aug, params_slab, gumbel)

    # Large rollout: tile the batch; parallel axis lets v7x shard across its 2 TCs.
    assert B % _BATCH_TILE == 0
    pr, pc = params_slab.shape
    return pl.pallas_call(
        kernel,
        out_shape=out_shape,
        grid=(B // _BATCH_TILE,),
        in_specs=[
            pl.BlockSpec((_BATCH_TILE, d_in + 1), lambda i: (i, 0)),
            pl.BlockSpec((pr, pc), lambda i: (0, 0)),
            pl.BlockSpec((_BATCH_TILE, d_out), lambda i: (i, 0)),
        ],
        out_specs=pl.BlockSpec((_BATCH_TILE, 2), lambda i: (i, 0)),
        compiler_params=pltpu.CompilerParams(dimension_semantics=("parallel",)),
    )(x_aug, params_slab, gumbel)


def init_params(key, input_dim, hidden_units, output_dim):
    """Deterministic synthetic init (stand-in for layer_init / orthogonal)."""
    # TODO(synk): generalize the packed kernel to arbitrary hidden-layer counts.
    assert len(hidden_units) == 1, "packed kernel currently supports one hidden layer"
    h = hidden_units[0]
    k1, k2, k3, k4 = jax.random.split(key, 4)
    w1 = jax.random.normal(k1, (input_dim, h), dtype=jnp.float32) * 0.1
    b1 = jax.random.normal(k2, (1, h), dtype=jnp.float32) * 0.1
    w2 = jax.random.normal(k3, (h, output_dim), dtype=jnp.float32) * 0.1
    b2 = jax.random.normal(k4, (1, output_dim), dtype=jnp.float32) * 0.1
    return w1, b1, w2, b2


def pack_params(w1, b1, w2, b2):
    """Fold biases into a single weight slab (one HBM->VMEM DMA per call)."""
    d_in, h = w1.shape
    _, d_out = w2.shape
    din1 = d_in + 1
    r1 = _round_up(din1, 8)
    cols = max(h, d_out)
    slab = jnp.zeros((r1 + h + 1, cols), dtype=jnp.float32)
    slab = slab.at[:d_in, :h].set(w1.astype(jnp.float32))
    slab = slab.at[d_in:din1, :h].set(b1.reshape(1, h).astype(jnp.float32))
    slab = slab.at[r1:r1 + h, :d_out].set(w2.astype(jnp.float32))
    slab = slab.at[r1 + h:r1 + h + 1, :d_out].set(b2.reshape(1, d_out).astype(jnp.float32))
    return slab, (d_in, h, d_out)


def fully_connected_feed_forward(obs, params_slab, dims, key):
    """Mirrors FullyConnectedFeedForward.forward; accepts a single obs (D_in,) or a
    batched rollout (B, D_in). `key` must differ per invocation (fresh Gumbel noise)."""
    d_in, h, d_out = dims
    x = jnp.atleast_2d(jnp.asarray(obs, dtype=jnp.float32))      # unsqueeze(0) for 1-D obs
    B = x.shape[0]
    B8 = _round_up(max(B, 1), 8)
    B_pad = B8 if B8 <= _BATCH_TILE else _round_up(B, _BATCH_TILE)
    if B_pad != B:
        x = jnp.pad(x, ((0, B_pad - B), (0, 0)))
    x_aug = jnp.concatenate([x, jnp.ones((B_pad, 1), jnp.float32)], axis=-1)
    gumbel = jax.random.gumbel(key, (B_pad, d_out), dtype=jnp.float32)

    out = _policy_sample(x_aug, params_slab, gumbel, dims)       # (B_pad, 2) f32
    action = out[:B, 0:1].astype(jnp.int32)
    log_probability = out[:B, 1:2]
    return {"action": action, "action_log_probability": log_probability}


if __name__ == "__main__":
    input_dim, hidden_units, output_dim = 16, (32,), 8
    B = 8  # batched rollout (multiple of 8 f32 sublanes) — amortizes dispatch/DMA cost

    root = jax.random.PRNGKey(0)
    pkey, xkey, skey = jax.random.split(root, 3)

    w1, b1, w2, b2 = init_params(pkey, input_dim, hidden_units, output_dim)
    params_slab, dims = pack_params(w1, b1, w2, b2)
    obs = jax.random.normal(xkey, (B, input_dim), dtype=jnp.float32)

    out = fully_connected_feed_forward(obs, params_slab, dims, skey)
    jax.block_until_ready(out)

    # Pure-JAX reference (same Gumbel noise the wrapper draws from `skey`).
    g = jax.random.gumbel(skey, (B, output_dim), dtype=jnp.float32)
    hh = jnp.maximum(obs @ w1 + b1, 0.0)
    oo = jnp.maximum(hh @ w2 + b2, 0.0)
    lp = jax.nn.log_softmax(oo, axis=-1)
    ref_action = jnp.argmax(lp + g, axis=-1)[:, None].astype(jnp.int32)
    ref_logp = jnp.take_along_axis(lp, ref_action, axis=-1)

    assert out["action"].shape == (B, 1)
    assert out["action_log_probability"].shape == (B, 1)
    assert bool(jnp.all((out["action"] >= 0) & (out["action"] < output_dim)))
    assert bool(jnp.all(out["action"] == ref_action))
    assert bool(jnp.allclose(out["action_log_probability"], ref_logp, atol=1e-5))
    assert float(jnp.max(out["action_log_probability"])) <= 0.0
    print("KERNEL_OK")
</pallas_src>

<mosaic_0001>
module attributes {stable_mosaic.version = 11 : i64} {
  func.func @kernel(%arg0: memref<8x17xf32, #tpu.memory_space<vmem>>, %arg1: memref<57x32xf32, #tpu.memory_space<vmem>>, %arg2: memref<8x8xf32, #tpu.memory_space<vmem>>, %arg3: memref<8x2xf32, #tpu.memory_space<vmem>>) attributes {dimension_semantics = [], scalar_prefetch = 0 : i64, scratch_operands = 0 : i64, tpu.core_type = #tpu.core_type<tc>} {
    %c0 = arith.constant 0 : index
    %c0_0 = arith.constant 0 : index
    %0 = vector.load %arg0[%c0, %c0_0] : memref<8x17xf32, #tpu.memory_space<vmem>>, vector<8x17xf32>
    %c0_1 = arith.constant 0 : index
    %c0_2 = arith.constant 0 : index
    %1 = vector.load %arg1[%c0_1, %c0_2] : memref<57x32xf32, #tpu.memory_space<vmem>>, vector<17x32xf32>
    %c24 = arith.constant 24 : index
    %c0_3 = arith.constant 0 : index
    %2 = vector.load %arg1[%c24, %c0_3] : memref<57x32xf32, #tpu.memory_space<vmem>>, vector<32x8xf32>
    %c56 = arith.constant 56 : index
    %c0_4 = arith.constant 0 : index
    %3 = vector.load %arg1[%c56, %c0_4] : memref<57x32xf32, #tpu.memory_space<vmem>>, vector<1x8xf32>
    %cst = arith.constant dense<0.000000e+00> : vector<8x32xf32>
    %4 = tpu.matmul %0, %1, %cst {dimension_numbers = #tpu.dot_dimension_numbers<[1], [0], [0], [1], [0, 0, 1, 1], [], []>} : vector<8x17xf32>, vector<17x32xf32>, vector<8x32xf32> -> vector<8x32xf32>
    %cst_5 = arith.constant 0.000000e+00 : f32
    %5 = vector.broadcast %cst_5 : f32 to vector<8x32xf32>
    %6 = arith.maximumf %4, %5 : vector<8x32xf32>
    %cst_6 = arith.constant dense<0.000000e+00> : vector<8x8xf32>
    %7 = tpu.matmul %6, %2, %cst_6 {dimension_numbers = #tpu.dot_dimension_numbers<[1], [0], [0], [1], [0, 0, 1, 1], [], []>} : vector<8x32xf32>, vector<32x8xf32>, vector<8x8xf32> -> vector<8x8xf32>
    %8 = vector.broadcast %3 : vector<1x8xf32> to vector<8x8xf32>
    %9 = arith.addf %7, %8 : vector<8x8xf32>
    %cst_7 = arith.constant 0.000000e+00 : f32
    %10 = vector.broadcast %cst_7 : f32 to vector<8x8xf32>
    %11 = arith.maximumf %9, %10 : vector<8x8xf32>
    %cst_8 = arith.constant dense<0xFF800000> : vector<8xf32>
    %12 = vector.multi_reduction <maximumf>, %11, %cst_8 [1] : vector<8x8xf32> to vector<8xf32>
    %13 = vector.shape_cast %12 : vector<8xf32> to vector<8x1xf32>
    %14 = vector.broadcast %13 : vector<8x1xf32> to vector<8x8xf32>
    %15 = arith.subf %11, %14 : vector<8x8xf32>
    %16 = math.exp %15 : vector<8x8xf32>
    %cst_9 = arith.constant dense<0.000000e+00> : vector<8xf32>
    %17 = vector.multi_reduction <add>, %16, %cst_9 [1] : vector<8x8xf32> to vector<8xf32>
    %18 = vector.shape_cast %17 : vector<8xf32> to vector<8x1xf32>
    %19 = math.log %18 : vector<8x1xf32>
    %20 = vector.broadcast %19 : vector<8x1xf32> to vector<8x8xf32>
    %21 = arith.subf %15, %20 : vector<8x8xf32>
    %c0_10 = arith.constant 0 : index
    %c0_11 = arith.constant 0 : index
    %22 = vector.load %arg2[%c0_10, %c0_11] : memref<8x8xf32, #tpu.memory_space<vmem>>, vector<8x8xf32>
    %23 = arith.addf %21, %22 : vector<8x8xf32>
    %24 = tpu.iota {dimensions = array<i32: 1>} : vector<8x8xi32>
    %cst_12 = arith.constant dense<0xFF800000> : vector<8xf32>
    %25 = vector.multi_reduction <maximumf>, %23, %cst_12 [1] : vector<8x8xf32> to vector<8xf32>
    %26 = vector.shape_cast %25 : vector<8xf32> to vector<8x1xf32>
    %27 = vector.broadcast %26 : vector<8x1xf32> to vector<8x8xf32>
    %28 = arith.cmpf oeq, %23, %27 : vector<8x8xf32>
    %c8_i32 = arith.constant 8 : i32
    %29 = vector.broadcast %c8_i32 : i32 to vector<8x8xi32>
    %30 = arith.select %28, %24, %29 : vector<8x8xi1>, vector<8x8xi32>
    %cst_13 = arith.constant dense<2147483647> : vector<8xi32>
    %31 = vector.multi_reduction <minsi>, %30, %cst_13 [1] : vector<8x8xi32> to vector<8xi32>
    %32 = vector.shape_cast %31 : vector<8xi32> to vector<8x1xi32>
    %33 = vector.broadcast %32 : vector<8x1xi32> to vector<8x8xi32>
    %34 = arith.cmpi eq, %24, %33 : vector<8x8xi32>
    %cst_14 = arith.constant 0.000000e+00 : f32
    %35 = vector.broadcast %cst_14 : f32 to vector<8x8xf32>
    %36 = arith.select %34, %21, %35 : vector<8x8xi1>, vector<8x8xf32>
    %cst_15 = arith.constant dense<0.000000e+00> : vector<8xf32>
    %37 = vector.multi_reduction <add>, %36, %cst_15 [1] : vector<8x8xf32> to vector<8xf32>
    %38 = vector.shape_cast %37 : vector<8xf32> to vector<8x1xf32>
    %39 = arith.sitofp %32 : vector<8x1xi32> to vector<8x1xf32>
    %c0_16 = arith.constant 0 : index
    %c0_17 = arith.constant 0 : index
    %40 = vector.load %arg3[%c0_16, %c0_17] : memref<8x2xf32, #tpu.memory_space<vmem>>, vector<8x1xf32>
    tpu.vector_store %arg3[%c0_16, %c0_17], %39 {strides = array<i32>} : memref<8x2xf32, #tpu.memory_space<vmem>>, vector<8x1xf32>,
    %c0_18 = arith.constant 0 : index
    %c1 = arith.constant 1 : index
    %41 = vector.load %arg3[%c0_18, %c1] : memref<8x2xf32, #tpu.memory_space<vmem>>, vector<8x1xf32>
    tpu.vector_store %arg3[%c0_18, %c1], %38 {strides = array<i32>} : memref<8x2xf32, #tpu.memory_space<vmem>>, vector<8x1xf32>,
    return
  }
}

</mosaic_0001>

<bundles_post_ra>
// kernel: tpu_custom_call.1
= control target key start
LH: loop header
LB: loop body
LE: loop exit
PB: predicated region body
PF: predicated region fallthrough
CT: control target
= control target key end

     0   :  { %vm27_vm0 = vcmask 1040384   ;;  %v271_v0 = vmov 0.0   ;;  %vm272_vm1 = vmmov 0   ;;  %vm23_vm2 = vcmask 138240   ;;  %s336_s1 = inlined_call_operand.vmem [shape: f32[57,32], index: 1, kind: input, shape index: {}]   ;;  %s337_s0 = inlined_call_operand.vmem [shape: f32[8,17], index: 0, kind: input, shape index: {}]   ;;  %s338_s2 = inlined_call_operand.vmem [shape: f32[8,8], index: 2, kind: input, shape index: {}]   ;;  %s339_s3 = inlined_call_operand.vmem [shape: f32[8,2], index: 3, kind: output, shape index: {}]  }
   0x1   :  { %245 = vmatprep.subr.mxu0 %v271_v0  ;;  %v17_v1 = vld [vmem:[%s336_s1 + $0x10] sm:$0x1]  ;;  %v16_v2 = vld [vmem:[%s336_s1 + $0x8] sm:$0xff]  ;;  %251 = vmatprep.mubr.msk.f32.mxu0 %vm272_vm1, %v271_v0  ;;  %v15_v5 = vld [vmem:[%s336_s1] sm:$0xff]  ;;  %vm106_vm3 = vcmask 261120   ;;  %vm181_vm4 = vcmask 64512   ;;  %v196_v30 = vlaneseq }
   0x2   :  { %246 = vmatpush3.msk.msra.mxu0 %vm27_vm0, %v17_v1  ;;  %254 = vmatprep.subr.mxu1 %v271_v0  ;;  %v21_v3 = vld [vmem:[%s336_s1 + $0x30] sm:$0xff]  ;;  %v20_v4 = vld [vmem:[%s336_s1 + $0x28] sm:$0xff]  ;;  %v14_v6 = vld [vmem:[%s337_s0] sm:$0xff]  ;;  %vm224_vm7 = vcmask 7168   ;;  %vm226_vm9 = vcmask 15368  }
   0x3   :  { %247 = vmatprep.subr.mxu0 %v271_v0  ;;  %255 = vmatpush3.msra.mxu1 %v21_v3  ;;  %v19_v7 = vld [vmem:[%s336_s1 + $0x20] sm:$0xff]  ;;  %v18_v8 = vld [vmem:[%s336_s1 + $0x18] sm:$0xff]  ;;  %v197_v31 = vand.u32 127, %v196_v30 }
   0x4   :  { %248 = vmatpush3.msra.mxu0 %v16_v2  ;;  %256 = vmatprep.subr.mxu1 %v271_v0  ;;  %v234_v12 = vld [vmem:[%s336_s1 + $0x38] ss:$0 sm:$0xff]  ;;  %v194_v26 = vld [vmem:[%s338_s2] sm:$0xff] }
   0x5   :  { %249 = vmatprep.subr.mxu0 %v271_v0  ;;  %257 = vmatpush3.msra.mxu1 %v20_v4 }
   0x6   :  { %250 = vmatpush3.msra.mxu0 %v15_v5  ;;  %258 = vmatprep.subr.mxu1 %v271_v0 }
   0x7   :  { %252 = vmatmul.mubr.msk.f32.vlgmr.msra.gmra.mxu0 %vm23_vm2, %v14_v6  ;;  %262 = vmatprep.mubr.msk.f32.mxu1 %vm272_vm1, %v271_v0 }
   0x8   :  { %259 = vmatpush3.msra.mxu1 %v19_v7 }
   0x9   :  { %260 = vmatprep.subr.mxu1 %v271_v0 }
   0xa   :  { %261 = vmatpush3.msra.mxu1 %v18_v8 }
  0xc7   :  { %v97_v9 = vpop.f32.mrf.mxu0 }
  0xc8   :  { %v101_v10 = vmax.f32 %v97_v9, 0.0 }
  0xc9   :  { %v253_v11 = vpop.f32.mrf.mxu0 }
  0xca   :  { %263 = vmatmul.mubr.msk.f32.vlgmr.msra.gmra.mxu1 %vm106_vm3, %v101_v10 }
 0x18a   :  { %v176_v13 = vpop.f32.mrf.mxu1 }
 0x18b   :  { %v177_v14 = vadd.f32 %v234_v12, %v176_v13 }
 0x18c   :  { %v264_v15 = vpop.f32.mrf.mxu1 }
 0x18d   :  { %v180_v16 = vmax.f32 %v177_v14, 0.0 }
 0x18f   :  { %v182_v17 = vsel %vm181_vm4, %v180_v16, -inf }
 0x190   :  { %183 = vmax.xlane.f32.xlu0 %v182_v17 }
 0x219   :  { %v184_v18 = vpop.xlane.xlu0 %183 }
 0x21a   :  { %v185_v19 = vsub.f32 %v180_v16, %v184_v18 }
 0x21c   :  { %v186_v20 = vmul.f32 1.442695, %v185_v19 }
 0x21e   :  { %267 = vpow2.f32 %v186_v20 }
 0x22b   :  { %v268_v21 = vpop.eup %267 }
 0x22c   :  { %v188_v22 = vsel %vm181_vm4, %v268_v21, 0.0 }
 0x22d   :  { %189 = vadd.xlane.f32.xlu0 %v188_v22 }
 0x2b6   :  { %v190_v23 = vpop.xlane.xlu0 %189 }
 0x2b7   :  { %269 = vlog2.f32 %v190_v23 }
 0x2c4   :  { %v270_v24 = vpop.eup %269 }
 0x2c5   :  { %v192_v25 = vmul.f32 0.6931472, %v270_v24 }
 0x2c7   :  { %v193_v27 = vsub.f32 %v185_v19, %v192_v25 }
 0x2c9   :  { %v195_v28 = vadd.f32 %v194_v26, %v193_v27 }
 0x2cb   :  { %v198_v29 = vsel %vm181_vm4, %v195_v28, -inf }
 0x2cc   :  { %199 = vmax.xlane.f32.xlu1 %v198_v29 }
 0x355   :  { %v200_v32 = vpop.xlane.xlu1 %199 }
 0x356   :  { %vm201_vm5 = vcmp.eq.f32.partialorder %v195_v28, %v200_v32 }
 0x357   :  { %v202_v33 = vsel %vm201_vm5, %v197_v31, 8 }
 0x358   :  { %v203_v34 = vsel %vm181_vm4, %v202_v33, 2147483647 }
 0x359   :  { %v205_v35 = vshra.s32 %v203_v34, 16  ;;  %v204_v37 = vand.u32 65535, %v203_v34 }
 0x35b   :  { %v207_v36 = vcvt.s32.f32 %v205_v35  ;;  %v206_v39 = vcvt.s32.f32 %v204_v37 }
 0x35d   :  { %208 = vmin.xlane.f32.xlu1 %v207_v36 }
 0x3e6   :  { %v209_v38 = vpop.xlane.xlu1 %208 }
 0x3e7   :  { %vm210_vm6 = vcmp.eq.f32.partialorder %v207_v36, %v209_v38  ;;  %v215_v41 = vcvt.f32.s32 %v209_v38 }
 0x3e8   :  { %v211_v40 = vsel %vm210_vm6, %v206_v39, inf }
 0x3e9   :  { %212 = vmin.xlane.f32.xlu0 %v211_v40  ;;  %v216_v43 = vshll.u32 %v215_v41, 16 }
 0x472   :  { %v213_v42 = vpop.xlane.xlu0 %212 }
 0x473   :  { %v214_v44 = vcvt.f32.s32 %v213_v42 }
 0x475   :  { %v217_v45 = vadd.s32 %v216_v43, %v214_v44 }
 0x477   :  { %v223_v46 = vcvt.s32.f32 %v217_v45  ;;  %vm218_vm8 = vcmp.eq.s32.totalorder %v197_v31, %v217_v45 }
 0x478   :  { %v219_v47 = vsel %vm218_vm8, %v193_v27, 0.0 }
 0x479   :  { %v220_v48 = vsel %vm181_vm4, %v219_v47, 0.0  ;;  %225 = vst.msk [vmem:[%s339_s3] sm:$0xff] %vm224_vm7, %v223_v46 }
 0x47a   :  { %221 = vadd.xlane.f32.xlu1 %v220_v48 }
 0x503   :  { %v222_v49 = vpop.xlane.xlu1 %221 }
 0x504   :  { %227 = vst.msk [vmem:[%s339_s3] sm:$0xff] %vm226_vm9, %v222_v49 }

</bundles_post_ra>
